<compile_context>
chip_gen: v5e
topology: v5e:2x2
jax: 0.10.0
libtpu: 0.0.40
codegen_flags: <defaults>
</compile_context>

<pallas_src>
import jax
import jax.numpy as jnp
import numpy as np
from jax.experimental import pallas as pl
from jax.experimental.pallas import tpu as pltpu

_DOT = (((1,), (0,)), ((), ()))   # contract lhs dim 1 with rhs dim 0


def _band_from_conv_weight(wt, W):
    """(Cout, Cin, 3, 3) conv weight -> (3, Cin, W, Cout, W) banded tensor so
    that a matmul against activations packed lane = ci*W + w' (one column group
    per H-tap, group ky holding input row h+ky-1) reproduces a 'same' 3x3 conv.
    The W-direction zero padding is implicit (out-of-range taps get 0 weight)."""
    wp = np.arange(W)[:, None]          # input column w'
    wo = np.arange(W)[None, :]          # output column w
    S = np.stack([(wp == wo + kx - 1) for kx in range(3)], 0).astype(np.float32)
    return jnp.einsum('oiyx,xuv->yiuov', wt.astype(jnp.float32), S)


def up_conv_cat_forward(from_bottom, from_side, params, eps=1e-5):
    f32, bf16 = jnp.float32, jnp.bfloat16
    N, Cb, Hb, Wb = from_bottom.shape
    _, Cs, H, W = from_side.shape
    Cout = params["w1"].shape[0]
    assert H == 2 * Hb and W == 2 * Wb
    Ls, Lbb, Lo = Cs * W, Cb * Wb, Cout * W
    KB, K1, K2 = 4 * Lbb, 4 * Lbb + 3 * Ls, 3 * Lo
    NH = N * H

    w1f = params["w1"].astype(f32)
    w1s, w1b = w1f[:, :Cs], w1f[:, Cs:]
    w_up = params["w_up"].astype(f32)
    b_up = params["b_up"].astype(f32)

    # ---- activations: pack channel-major on lanes (lane = c*W + w) ---------
    xs = jnp.transpose(from_side, (0, 2, 1, 3)).reshape(N, H, Ls).astype(bf16)
    xb = jnp.transpose(from_bottom, (0, 2, 1, 3)).reshape(N, Hb, Lbb).astype(f32)

    # Bottom-row taps: output row h needs bottom rows r0=(h-1)//2, r1=(h+1)//2
    # with parity-dependent fused weights.  Gather + parity/validity masking
    # (all static constants) produces a lane-dense (N*H, 4*Lbb=128) bf16 slab.
    hv = np.arange(H)
    r0i, r1i = (hv - 1) // 2, (hv + 1) // 2
    v0 = (r0i >= 0).astype(np.float32)[None, :, None]
    v1 = (r1i < Hb).astype(np.float32)[None, :, None]
    evn = (hv % 2 == 0).astype(np.float32)[None, :, None]
    odd = 1.0 - evn
    g0 = xb[:, np.clip(r0i, 0, Hb - 1), :] * v0
    g1 = xb[:, np.clip(r1i, 0, Hb - 1), :] * v1
    xbt = jnp.concatenate([g0 * evn, g1 * evn, g0 * odd, g1 * odd], axis=-1)
    xbt = xbt.reshape(NH, KB).astype(bf16)

    # ---- conv1 weight: [fused (upconv o conv1) bottom part | banded side] --
    # Tap table T[parity, slot(r0/r1), ky, kh]: which (conv1 H-tap, upconv row)
    # pairs are active for each output-row parity and bottom-row slot.
    T = np.zeros((2, 2, 3, 2), np.float32)
    T[0, 0, 0, 1] = 1.0                          # h even, r0: (ky=0, kh=1)
    T[0, 1, 1, 0] = 1.0; T[0, 1, 2, 1] = 1.0     # h even, r1: (1,0), (2,1)
    T[1, 0, 0, 0] = 1.0; T[1, 0, 1, 1] = 1.0     # h odd,  r0: (0,0), (1,1)
    T[1, 1, 2, 0] = 1.0                          # h odd,  r1: (2,0)
    kx = np.arange(3)[:, None, None, None]
    kw = np.arange(2)[None, :, None, None]
    wbv = np.arange(Wb)[None, None, :, None]
    wv = np.arange(W)[None, None, None, :]
    Sx = (wv + kx - 1 == 2 * wbv + kw).astype(np.float32)        # (3,2,Wb,W)
    w_bot = jnp.einsum('psyh,ichk,ocyx,xkbw->psibow', T, w_up, w1b, Sx)
    w_bot = w_bot.reshape(KB, Lo)
    w_side = _band_from_conv_weight(w1s, W).reshape(3 * Ls, Lo)
    w1_all = jnp.concatenate([w_bot, w_side], axis=0).astype(bf16)   # (K1, Lo)

    # Effective conv1 bias: b1 plus the upconv bias pushed through conv1's
    # taps (position-dependent at the image borders because of zero padding).
    Vh = np.stack([((hv + ky - 1 >= 0) & (hv + ky - 1 < H)) for ky in range(3)],
                  0).astype(np.float32)                          # (3, H)
    wvv = np.arange(W)
    Vw = np.stack([((wvv + k - 1 >= 0) & (wvv + k - 1 < W)) for k in range(3)],
                  0).astype(np.float32)                          # (3, W)
    bias_bot = jnp.einsum('ocyx,c,yh,xw->how', w1b, b_up, Vh, Vw)  # (H,Cout,W)
    b1eff = (bias_bot + params["b1"].astype(f32)[None, :, None]).reshape(H, Lo)
    b1eff = jnp.tile(b1eff, (N, 1))                                # (NH, Lo)

    # conv2 banded weight + lane-tiled per-channel vectors
    w2_all = _band_from_conv_weight(params["w2"], W).reshape(K2, Lo).astype(bf16)
    b2_l = jnp.repeat(params["b2"].astype(f32), W).reshape(1, Lo)
    g_l = jnp.repeat(params["gamma"].astype(f32), W).reshape(1, Lo)
    be_l = jnp.repeat(params["beta"].astype(f32), W).reshape(1, Lo)

    inv_cnt = 1.0 / float(N * H * W)

    # ---- the single fused kernel -------------------------------------------
    def kernel(xs_ref, xbt_ref, w1_ref, b1_ref, w2_ref, b2_ref, g_ref, be_ref,
               o_ref, xcat_s, acat_s):
        # Build conv1 input (M = N*H, K = K1) in VMEM scratch.  Column layout:
        # [bottom taps (128) | side ky=0 | ky=1 | ky=2]; no store crosses a
        # 128-lane tile boundary.
        xcat_s[:, 0:KB] = xbt_ref[...].astype(f32)
        c0, c1, c2 = KB, KB + Ls, KB + 2 * Ls
        for n in range(N):                                      # static unroll
            r = n * H
            xsn = xs_ref[n].astype(f32)                         # (H, Ls)
            xcat_s[r:r + 1, c0:c0 + Ls] = jnp.zeros((1, Ls), f32)       # h=0, ky=0
            xcat_s[r + 1:r + H, c0:c0 + Ls] = xsn[0:H - 1, :]
            xcat_s[r:r + H, c1:c1 + Ls] = xsn
            xcat_s[r:r + H - 1, c2:c2 + Ls] = xsn[1:H, :]
            xcat_s[r + H - 1:r + H, c2:c2 + Ls] = jnp.zeros((1, Ls), f32)  # h=H-1, ky=2

        # conv1 (+ folded ConvTranspose2d) as ONE MXU matmul over the batch.
        y1 = jax.lax.dot_general(xcat_s[...].astype(bf16), w1_ref[...], _DOT,
                                 preferred_element_type=f32) + b1_ref[...]

        # BatchNorm batch statistics (per channel over N,H,W), exact f32.
        s1 = jnp.sum(y1, axis=0, keepdims=True)
        s2 = jnp.sum(y1 * y1, axis=0, keepdims=True)
        st = jnp.concatenate([s1, s2], axis=0)                  # (2, Lo)
        parts = []
        for c in range(Cout):                                   # static unroll
            seg = st[:, c * W:(c + 1) * W]
            parts.append(jnp.broadcast_to(jnp.sum(seg, axis=1, keepdims=True),
                                          (2, W)))
        chan = jnp.concatenate(parts, axis=1)                   # channel totals, lane-tiled
        mean = chan[0:1] * inv_cnt
        var = jnp.maximum(chan[1:2] * inv_cnt - mean * mean, 0.0)
        scale = g_ref[...] * jax.lax.rsqrt(var + eps)
        shift = be_ref[...] - mean * scale
        a = jnp.maximum(y1 * scale + shift, 0.0)                # BN + ReLU (f32)

        # Build conv2 input (3 H-taps) in VMEM scratch (128-aligned columns).
        for n in range(N):
            r = n * H
            an = a[r:r + H]
            acat_s[r:r + 1, 0:Lo] = jnp.zeros((1, Lo), f32)
            acat_s[r + 1:r + H, 0:Lo] = an[0:H - 1, :]
            acat_s[r:r + H, Lo:2 * Lo] = an
            acat_s[r:r + H - 1, 2 * Lo:3 * Lo] = an[1:H, :]
            acat_s[r + H - 1:r + H, 2 * Lo:3 * Lo] = jnp.zeros((1, Lo), f32)

        # conv2 + bias + ReLU.
        y2 = jax.lax.dot_general(acat_s[...].astype(bf16), w2_ref[...], _DOT,
                                 preferred_element_type=f32)
        o_ref[...] = jnp.maximum(y2 + b2_ref[...], 0.0)

    out_p = pl.pallas_call(
        kernel,
        out_shape=jax.ShapeDtypeStruct((NH, Lo), f32),
        scratch_shapes=[pltpu.VMEM((NH, K1), f32),
                        pltpu.VMEM((NH, K2), f32)],
        compiler_params=pltpu.CompilerParams(vmem_limit_bytes=32 * 1024 * 1024),
    )(xs, xbt, w1_all, b1eff, w2_all, b2_l, g_l, be_l)

    # (N*H, Cout*W) -> NCHW (lane dim stays minor; drop if caller takes packed).
    return jnp.transpose(out_p.reshape(N, H, Cout, W), (0, 2, 1, 3))


# ----------------------------------------------------------------------------
# Pure-JAX reference (f32) for a loose self-check of the bf16 kernel.
# ----------------------------------------------------------------------------
def _reference_forward(from_bottom, from_side, params, eps=1e-5):
    t = jnp.einsum('nchw,cokl->nohkwl', from_bottom, params["w_up"])
    N, Co, Hb, _, Wb, _ = t.shape
    x1 = t.reshape(N, Co, 2 * Hb, 2 * Wb) + params["b_up"][None, :, None, None]
    x2 = jnp.concatenate([from_side, x1], axis=1)
    dn = ('NCHW', 'OIHW', 'NCHW')
    y1 = jax.lax.conv_general_dilated(x2, params["w1"], (1, 1), ((1, 1), (1, 1)),
                                      dimension_numbers=dn)
    y1 = y1 + params["b1"][None, :, None, None]
    mean = y1.mean(axis=(0, 2, 3))
    var = y1.var(axis=(0, 2, 3))
    a = (y1 - mean[None, :, None, None]) / jnp.sqrt(var[None, :, None, None] + eps)
    a = a * params["gamma"][None, :, None, None] + params["beta"][None, :, None, None]
    a = jnp.maximum(a, 0.0)
    y2 = jax.lax.conv_general_dilated(a, params["w2"], (1, 1), ((1, 1), (1, 1)),
                                      dimension_numbers=dn)
    return jnp.maximum(y2 + params["b2"][None, :, None, None], 0.0)


# ----------------------------------------------------------------------------
# Main
# ----------------------------------------------------------------------------
if __name__ == "__main__":
    input_channels = 8
    output_channels = 8
    C_half = input_channels // 2
    N, Hs, Ws = 2, 16, 16          # from_side spatial size
    Hb, Wb = Hs // 2, Ws // 2      # from_bottom spatial size

    key = jax.random.PRNGKey(0)
    ks = jax.random.split(key, 10)
    params = {
        # ConvTranspose2d(C/2, C/2, 2, stride=2): weight (in, out, kh, kw)
        "w_up": jax.random.normal(ks[0], (C_half, C_half, 2, 2), jnp.float32) * 0.1,
        "b_up": jax.random.normal(ks[1], (C_half,), jnp.float32) * 0.1,
        # Conv2d(input_channels, output_channels, 3): weight (out, in, kh, kw)
        "w1": jax.random.normal(ks[2], (output_channels, input_channels, 3, 3), jnp.float32) * 0.1,
        "b1": jax.random.normal(ks[3], (output_channels,), jnp.float32) * 0.1,
        # BatchNorm2d(output_channels) affine params
        "gamma": 1.0 + 0.1 * jax.random.normal(ks[8], (output_channels,), jnp.float32),
        "beta": 0.1 * jax.random.normal(ks[9], (output_channels,), jnp.float32),
        # Conv2d(output_channels, output_channels, 3)
        "w2": jax.random.normal(ks[4], (output_channels, output_channels, 3, 3), jnp.float32) * 0.1,
        "b2": jax.random.normal(ks[5], (output_channels,), jnp.float32) * 0.1,
    }

    from_bottom = jax.random.normal(ks[6], (N, C_half, Hb, Wb), jnp.float32)             # NCHW
    from_side = jax.random.normal(ks[7], (N, input_channels - C_half, Hs, Ws), jnp.float32)

    fwd = jax.jit(up_conv_cat_forward)
    out = jax.block_until_ready(fwd(from_bottom, from_side, params))
    assert out.shape == (N, output_channels, Hs, Ws), out.shape

    ref = jax.block_until_ready(_reference_forward(from_bottom, from_side, params))
    max_err = float(jnp.max(jnp.abs(out - ref)))
    assert max_err < 5e-2, f"max abs error vs f32 reference too large: {max_err}"
    print("KERNEL_OK")
</pallas_src>

<mosaic_0001>
module attributes {stable_mosaic.version = 11 : i64} {
  func.func @kernel(%arg0: memref<2x16x64xbf16, #tpu.memory_space<vmem>>, %arg1: memref<32x128xbf16, #tpu.memory_space<vmem>>, %arg2: memref<320x128xbf16, #tpu.memory_space<vmem>>, %arg3: memref<32x128xf32, #tpu.memory_space<vmem>>, %arg4: memref<384x128xbf16, #tpu.memory_space<vmem>>, %arg5: memref<1x128xf32, #tpu.memory_space<vmem>>, %arg6: memref<1x128xf32, #tpu.memory_space<vmem>>, %arg7: memref<1x128xf32, #tpu.memory_space<vmem>>, %arg8: memref<32x128xf32, #tpu.memory_space<vmem>>, %arg9: memref<32x320xf32, #tpu.memory_space<vmem>>, %arg10: memref<32x384xf32, #tpu.memory_space<vmem>>) attributes {dimension_semantics = [], scalar_prefetch = 0 : i64, scratch_operands = 2 : i64, tpu.core_type = #tpu.core_type<tc>} {
    %c0 = arith.constant 0 : index
    %c0_0 = arith.constant 0 : index
    %0 = vector.load %arg1[%c0, %c0_0] : memref<32x128xbf16, #tpu.memory_space<vmem>>, vector<32x128xbf16>
    %1 = arith.extf %0 : vector<32x128xbf16> to vector<32x128xf32>
    %c0_1 = arith.constant 0 : index
    %c0_2 = arith.constant 0 : index
    %2 = vector.load %arg9[%c0_1, %c0_2] : memref<32x320xf32, #tpu.memory_space<vmem>>, vector<32x128xf32>
    tpu.vector_store %arg9[%c0_1, %c0_2], %1 {strides = array<i32>} : memref<32x320xf32, #tpu.memory_space<vmem>>, vector<32x128xf32>,
    %c0_3 = arith.constant 0 : index
    %c0_4 = arith.constant 0 : index
    %c0_5 = arith.constant 0 : index
    %3 = vector.load %arg0[%c0_3, %c0_4, %c0_5] : memref<2x16x64xbf16, #tpu.memory_space<vmem>>, vector<1x16x64xbf16>
    %4 = vector.shape_cast %3 : vector<1x16x64xbf16> to vector<16x64xbf16>
    %5 = arith.extf %4 : vector<16x64xbf16> to vector<16x64xf32>
    %cst = arith.constant 0.000000e+00 : f32
    %6 = vector.broadcast %cst : f32 to vector<1x64xf32>
    %c0_6 = arith.constant 0 : index
    %c128 = arith.constant 128 : index
    %7 = vector.load %arg9[%c0_6, %c128] : memref<32x320xf32, #tpu.memory_space<vmem>>, vector<1x64xf32>
    tpu.vector_store %arg9[%c0_6, %c128], %6 {strides = array<i32>} : memref<32x320xf32, #tpu.memory_space<vmem>>, vector<1x64xf32>,
    %8 = vector.extract_strided_slice %5 {offsets = [0, 0], sizes = [15, 64], strides = [1, 1]} : vector<16x64xf32> to vector<15x64xf32>
    %c1 = arith.constant 1 : index
    %c128_7 = arith.constant 128 : index
    %9 = vector.load %arg9[%c1, %c128_7] : memref<32x320xf32, #tpu.memory_space<vmem>>, vector<15x64xf32>
    tpu.vector_store %arg9[%c1, %c128_7], %8 {strides = array<i32>} : memref<32x320xf32, #tpu.memory_space<vmem>>, vector<15x64xf32>,
    %c0_8 = arith.constant 0 : index
    %c192 = arith.constant 192 : index
    %10 = vector.load %arg9[%c0_8, %c192] : memref<32x320xf32, #tpu.memory_space<vmem>>, vector<16x64xf32>
    tpu.vector_store %arg9[%c0_8, %c192], %5 {strides = array<i32>} : memref<32x320xf32, #tpu.memory_space<vmem>>, vector<16x64xf32>,
    %11 = vector.extract_strided_slice %5 {offsets = [1, 0], sizes = [15, 64], strides = [1, 1]} : vector<16x64xf32> to vector<15x64xf32>
    %c0_9 = arith.constant 0 : index
    %c256 = arith.constant 256 : index
    %12 = vector.load %arg9[%c0_9, %c256] : memref<32x320xf32, #tpu.memory_space<vmem>>, vector<15x64xf32>
    tpu.vector_store %arg9[%c0_9, %c256], %11 {strides = array<i32>} : memref<32x320xf32, #tpu.memory_space<vmem>>, vector<15x64xf32>,
    %cst_10 = arith.constant 0.000000e+00 : f32
    %13 = vector.broadcast %cst_10 : f32 to vector<1x64xf32>
    %c15 = arith.constant 15 : index
    %c256_11 = arith.constant 256 : index
    %14 = vector.load %arg9[%c15, %c256_11] : memref<32x320xf32, #tpu.memory_space<vmem>>, vector<1x64xf32>
    tpu.vector_store %arg9[%c15, %c256_11], %13 {strides = array<i32>} : memref<32x320xf32, #tpu.memory_space<vmem>>, vector<1x64xf32>,
    %c1_12 = arith.constant 1 : index
    %c0_13 = arith.constant 0 : index
    %c0_14 = arith.constant 0 : index
    %15 = vector.load %arg0[%c1_12, %c0_13, %c0_14] : memref<2x16x64xbf16, #tpu.memory_space<vmem>>, vector<1x16x64xbf16>
    %16 = vector.shape_cast %15 : vector<1x16x64xbf16> to vector<16x64xbf16>
    %17 = arith.extf %16 : vector<16x64xbf16> to vector<16x64xf32>
    %cst_15 = arith.constant 0.000000e+00 : f32
    %18 = vector.broadcast %cst_15 : f32 to vector<1x64xf32>
    %c16 = arith.constant 16 : index
    %c128_16 = arith.constant 128 : index
    %19 = vector.load %arg9[%c16, %c128_16] : memref<32x320xf32, #tpu.memory_space<vmem>>, vector<1x64xf32>
    tpu.vector_store %arg9[%c16, %c128_16], %18 {strides = array<i32>} : memref<32x320xf32, #tpu.memory_space<vmem>>, vector<1x64xf32>,
    %20 = vector.extract_strided_slice %17 {offsets = [0, 0], sizes = [15, 64], strides = [1, 1]} : vector<16x64xf32> to vector<15x64xf32>
    %c17 = arith.constant 17 : index
    %c128_17 = arith.constant 128 : index
    %21 = vector.load %arg9[%c17, %c128_17] : memref<32x320xf32, #tpu.memory_space<vmem>>, vector<15x64xf32>
    tpu.vector_store %arg9[%c17, %c128_17], %20 {strides = array<i32>} : memref<32x320xf32, #tpu.memory_space<vmem>>, vector<15x64xf32>,
    %c16_18 = arith.constant 16 : index
    %c192_19 = arith.constant 192 : index
    %22 = vector.load %arg9[%c16_18, %c192_19] : memref<32x320xf32, #tpu.memory_space<vmem>>, vector<16x64xf32>
    tpu.vector_store %arg9[%c16_18, %c192_19], %17 {strides = array<i32>} : memref<32x320xf32, #tpu.memory_space<vmem>>, vector<16x64xf32>,
    %23 = vector.extract_strided_slice %17 {offsets = [1, 0], sizes = [15, 64], strides = [1, 1]} : vector<16x64xf32> to vector<15x64xf32>
    %c16_20 = arith.constant 16 : index
    %c256_21 = arith.constant 256 : index
    %24 = vector.load %arg9[%c16_20, %c256_21] : memref<32x320xf32, #tpu.memory_space<vmem>>, vector<15x64xf32>
    tpu.vector_store %arg9[%c16_20, %c256_21], %23 {strides = array<i32>} : memref<32x320xf32, #tpu.memory_space<vmem>>, vector<15x64xf32>,
    %cst_22 = arith.constant 0.000000e+00 : f32
    %25 = vector.broadcast %cst_22 : f32 to vector<1x64xf32>
    %c31 = arith.constant 31 : index
    %c256_23 = arith.constant 256 : index
    %26 = vector.load %arg9[%c31, %c256_23] : memref<32x320xf32, #tpu.memory_space<vmem>>, vector<1x64xf32>
    tpu.vector_store %arg9[%c31, %c256_23], %25 {strides = array<i32>} : memref<32x320xf32, #tpu.memory_space<vmem>>, vector<1x64xf32>,
    %c0_24 = arith.constant 0 : index
    %c0_25 = arith.constant 0 : index
    %27 = vector.load %arg9[%c0_24, %c0_25] : memref<32x320xf32, #tpu.memory_space<vmem>>, vector<32x320xf32>
    %28 = arith.truncf %27 : vector<32x320xf32> to vector<32x320xbf16>
    %c0_26 = arith.constant 0 : index
    %c0_27 = arith.constant 0 : index
    %29 = vector.load %arg2[%c0_26, %c0_27] : memref<320x128xbf16, #tpu.memory_space<vmem>>, vector<320x128xbf16>
    %cst_28 = arith.constant dense<0.000000e+00> : vector<32x128xf32>
    %30 = tpu.matmul %28, %29, %cst_28 {dimension_numbers = #tpu.dot_dimension_numbers<[1], [0], [0], [1], [0, 0, 1, 1], [], []>} : vector<32x320xbf16>, vector<320x128xbf16>, vector<32x128xf32> -> vector<32x128xf32>
    %c0_29 = arith.constant 0 : index
    %c0_30 = arith.constant 0 : index
    %31 = vector.load %arg3[%c0_29, %c0_30] : memref<32x128xf32, #tpu.memory_space<vmem>>, vector<32x128xf32>
    %32 = arith.addf %30, %31 : vector<32x128xf32>
    %cst_31 = arith.constant dense<0.000000e+00> : vector<128xf32>
    %33 = vector.multi_reduction <add>, %32, %cst_31 [0] : vector<32x128xf32> to vector<128xf32>
    %34 = vector.shape_cast %33 : vector<128xf32> to vector<1x128xf32>
    %35 = arith.mulf %32, %32 : vector<32x128xf32>
    %cst_32 = arith.constant dense<0.000000e+00> : vector<128xf32>
    %36 = vector.multi_reduction <add>, %35, %cst_32 [0] : vector<32x128xf32> to vector<128xf32>
    %37 = vector.shape_cast %36 : vector<128xf32> to vector<1x128xf32>
    %38 = tpu.concatenate %34, %37 in 0 : vector<1x128xf32>, vector<1x128xf32> -> vector<2x128xf32>
    %39 = vector.extract_strided_slice %38 {offsets = [0, 0], sizes = [2, 16], strides = [1, 1]} : vector<2x128xf32> to vector<2x16xf32>
    %cst_33 = arith.constant dense<0.000000e+00> : vector<2xf32>
    %40 = vector.multi_reduction <add>, %39, %cst_33 [1] : vector<2x16xf32> to vector<2xf32>
    %41 = vector.shape_cast %40 : vector<2xf32> to vector<2x1xf32>
    %42 = vector.shape_cast %41 : vector<2x1xf32> to vector<2x1xf32>
    %43 = vector.broadcast %42 : vector<2x1xf32> to vector<2x16xf32>
    %44 = vector.extract_strided_slice %38 {offsets = [0, 16], sizes = [2, 16], strides = [1, 1]} : vector<2x128xf32> to vector<2x16xf32>
    %cst_34 = arith.constant dense<0.000000e+00> : vector<2xf32>
    %45 = vector.multi_reduction <add>, %44, %cst_34 [1] : vector<2x16xf32> to vector<2xf32>
    %46 = vector.shape_cast %45 : vector<2xf32> to vector<2x1xf32>
    %47 = vector.shape_cast %46 : vector<2x1xf32> to vector<2x1xf32>
    %48 = vector.broadcast %47 : vector<2x1xf32> to vector<2x16xf32>
    %49 = vector.extract_strided_slice %38 {offsets = [0, 32], sizes = [2, 16], strides = [1, 1]} : vector<2x128xf32> to vector<2x16xf32>
    %cst_35 = arith.constant dense<0.000000e+00> : vector<2xf32>
    %50 = vector.multi_reduction <add>, %49, %cst_35 [1] : vector<2x16xf32> to vector<2xf32>
    %51 = vector.shape_cast %50 : vector<2xf32> to vector<2x1xf32>
    %52 = vector.shape_cast %51 : vector<2x1xf32> to vector<2x1xf32>
    %53 = vector.broadcast %52 : vector<2x1xf32> to vector<2x16xf32>
    %54 = vector.extract_strided_slice %38 {offsets = [0, 48], sizes = [2, 16], strides = [1, 1]} : vector<2x128xf32> to vector<2x16xf32>
    %cst_36 = arith.constant dense<0.000000e+00> : vector<2xf32>
    %55 = vector.multi_reduction <add>, %54, %cst_36 [1] : vector<2x16xf32> to vector<2xf32>
    %56 = vector.shape_cast %55 : vector<2xf32> to vector<2x1xf32>
    %57 = vector.shape_cast %56 : vector<2x1xf32> to vector<2x1xf32>
    %58 = vector.broadcast %57 : vector<2x1xf32> to vector<2x16xf32>
    %59 = vector.extract_strided_slice %38 {offsets = [0, 64], sizes = [2, 16], strides = [1, 1]} : vector<2x128xf32> to vector<2x16xf32>
    %cst_37 = arith.constant dense<0.000000e+00> : vector<2xf32>
    %60 = vector.multi_reduction <add>, %59, %cst_37 [1] : vector<2x16xf32> to vector<2xf32>
    %61 = vector.shape_cast %60 : vector<2xf32> to vector<2x1xf32>
    %62 = vector.shape_cast %61 : vector<2x1xf32> to vector<2x1xf32>
    %63 = vector.broadcast %62 : vector<2x1xf32> to vector<2x16xf32>
    %64 = vector.extract_strided_slice %38 {offsets = [0, 80], sizes = [2, 16], strides = [1, 1]} : vector<2x128xf32> to vector<2x16xf32>
    %cst_38 = arith.constant dense<0.000000e+00> : vector<2xf32>
    %65 = vector.multi_reduction <add>, %64, %cst_38 [1] : vector<2x16xf32> to vector<2xf32>
    %66 = vector.shape_cast %65 : vector<2xf32> to vector<2x1xf32>
    %67 = vector.shape_cast %66 : vector<2x1xf32> to vector<2x1xf32>
    %68 = vector.broadcast %67 : vector<2x1xf32> to vector<2x16xf32>
    %69 = vector.extract_strided_slice %38 {offsets = [0, 96], sizes = [2, 16], strides = [1, 1]} : vector<2x128xf32> to vector<2x16xf32>
    %cst_39 = arith.constant dense<0.000000e+00> : vector<2xf32>
    %70 = vector.multi_reduction <add>, %69, %cst_39 [1] : vector<2x16xf32> to vector<2xf32>
    %71 = vector.shape_cast %70 : vector<2xf32> to vector<2x1xf32>
    %72 = vector.shape_cast %71 : vector<2x1xf32> to vector<2x1xf32>
    %73 = vector.broadcast %72 : vector<2x1xf32> to vector<2x16xf32>
    %74 = vector.extract_strided_slice %38 {offsets = [0, 112], sizes = [2, 16], strides = [1, 1]} : vector<2x128xf32> to vector<2x16xf32>
    %cst_40 = arith.constant dense<0.000000e+00> : vector<2xf32>
    %75 = vector.multi_reduction <add>, %74, %cst_40 [1] : vector<2x16xf32> to vector<2xf32>
    %76 = vector.shape_cast %75 : vector<2xf32> to vector<2x1xf32>
    %77 = vector.shape_cast %76 : vector<2x1xf32> to vector<2x1xf32>
    %78 = vector.broadcast %77 : vector<2x1xf32> to vector<2x16xf32>
    %79 = tpu.concatenate %43, %48, %53, %58, %63, %68, %73, %78 in 1 : vector<2x16xf32>, vector<2x16xf32>, vector<2x16xf32>, vector<2x16xf32>, vector<2x16xf32>, vector<2x16xf32>, vector<2x16xf32>, vector<2x16xf32> -> vector<2x128xf32>
    %80 = vector.extract_strided_slice %79 {offsets = [0, 0], sizes = [1, 128], strides = [1, 1]} : vector<2x128xf32> to vector<1x128xf32>
    %cst_41 = arith.constant 0.001953125 : f32
    %81 = vector.broadcast %cst_41 : f32 to vector<1x128xf32>
    %82 = arith.mulf %80, %81 : vector<1x128xf32>
    %83 = vector.extract_strided_slice %79 {offsets = [1, 0], sizes = [1, 128], strides = [1, 1]} : vector<2x128xf32> to vector<1x128xf32>
    %cst_42 = arith.constant 0.001953125 : f32
    %84 = vector.broadcast %cst_42 : f32 to vector<1x128xf32>
    %85 = arith.mulf %83, %84 : vector<1x128xf32>
    %86 = arith.mulf %82, %82 : vector<1x128xf32>
    %87 = arith.subf %85, %86 : vector<1x128xf32>
    %cst_43 = arith.constant 0.000000e+00 : f32
    %88 = vector.broadcast %cst_43 : f32 to vector<1x128xf32>
    %89 = arith.maximumf %87, %88 : vector<1x128xf32>
    %c0_44 = arith.constant 0 : index
    %c0_45 = arith.constant 0 : index
    %90 = vector.load %arg6[%c0_44, %c0_45] : memref<1x128xf32, #tpu.memory_space<vmem>>, vector<1x128xf32>
    %cst_46 = arith.constant 9.99999974E-6 : f32
    %91 = vector.broadcast %cst_46 : f32 to vector<1x128xf32>
    %92 = arith.addf %89, %91 : vector<1x128xf32>
    %93 = math.rsqrt %92 : vector<1x128xf32>
    %94 = arith.mulf %90, %93 : vector<1x128xf32>
    %c0_47 = arith.constant 0 : index
    %c0_48 = arith.constant 0 : index
    %95 = vector.load %arg7[%c0_47, %c0_48] : memref<1x128xf32, #tpu.memory_space<vmem>>, vector<1x128xf32>
    %96 = arith.mulf %82, %94 : vector<1x128xf32>
    %97 = arith.subf %95, %96 : vector<1x128xf32>
    %98 = vector.broadcast %94 : vector<1x128xf32> to vector<32x128xf32>
    %99 = arith.mulf %32, %98 : vector<32x128xf32>
    %100 = vector.broadcast %97 : vector<1x128xf32> to vector<32x128xf32>
    %101 = arith.addf %99, %100 : vector<32x128xf32>
    %cst_49 = arith.constant 0.000000e+00 : f32
    %102 = vector.broadcast %cst_49 : f32 to vector<32x128xf32>
    %103 = arith.maximumf %101, %102 : vector<32x128xf32>
    %104 = vector.extract_strided_slice %103 {offsets = [0, 0], sizes = [16, 128], strides = [1, 1]} : vector<32x128xf32> to vector<16x128xf32>
    %cst_50 = arith.constant 0.000000e+00 : f32
    %105 = vector.broadcast %cst_50 : f32 to vector<1x128xf32>
    %c0_51 = arith.constant 0 : index
    %c0_52 = arith.constant 0 : index
    %106 = vector.load %arg10[%c0_51, %c0_52] : memref<32x384xf32, #tpu.memory_space<vmem>>, vector<1x128xf32>
    tpu.vector_store %arg10[%c0_51, %c0_52], %105 {strides = array<i32>} : memref<32x384xf32, #tpu.memory_space<vmem>>, vector<1x128xf32>,
    %107 = vector.extract_strided_slice %104 {offsets = [0, 0], sizes = [15, 128], strides = [1, 1]} : vector<16x128xf32> to vector<15x128xf32>
    %c1_53 = arith.constant 1 : index
    %c0_54 = arith.constant 0 : index
    %108 = vector.load %arg10[%c1_53, %c0_54] : memref<32x384xf32, #tpu.memory_space<vmem>>, vector<15x128xf32>
    tpu.vector_store %arg10[%c1_53, %c0_54], %107 {strides = array<i32>} : memref<32x384xf32, #tpu.memory_space<vmem>>, vector<15x128xf32>,
    %c0_55 = arith.constant 0 : index
    %c128_56 = arith.constant 128 : index
    %109 = vector.load %arg10[%c0_55, %c128_56] : memref<32x384xf32, #tpu.memory_space<vmem>>, vector<16x128xf32>
    tpu.vector_store %arg10[%c0_55, %c128_56], %104 {strides = array<i32>} : memref<32x384xf32, #tpu.memory_space<vmem>>, vector<16x128xf32>,
    %110 = vector.extract_strided_slice %104 {offsets = [1, 0], sizes = [15, 128], strides = [1, 1]} : vector<16x128xf32> to vector<15x128xf32>
    %c0_57 = arith.constant 0 : index
    %c256_58 = arith.constant 256 : index
    %111 = vector.load %arg10[%c0_57, %c256_58] : memref<32x384xf32, #tpu.memory_space<vmem>>, vector<15x128xf32>
    tpu.vector_store %arg10[%c0_57, %c256_58], %110 {strides = array<i32>} : memref<32x384xf32, #tpu.memory_space<vmem>>, vector<15x128xf32>,
    %cst_59 = arith.constant 0.000000e+00 : f32
    %112 = vector.broadcast %cst_59 : f32 to vector<1x128xf32>
    %c15_60 = arith.constant 15 : index
    %c256_61 = arith.constant 256 : index
    %113 = vector.load %arg10[%c15_60, %c256_61] : memref<32x384xf32, #tpu.memory_space<vmem>>, vector<1x128xf32>
    tpu.vector_store %arg10[%c15_60, %c256_61], %112 {strides = array<i32>} : memref<32x384xf32, #tpu.memory_space<vmem>>, vector<1x128xf32>,
    %114 = vector.extract_strided_slice %103 {offsets = [16, 0], sizes = [16, 128], strides = [1, 1]} : vector<32x128xf32> to vector<16x128xf32>
    %cst_62 = arith.constant 0.000000e+00 : f32
    %115 = vector.broadcast %cst_62 : f32 to vector<1x128xf32>
    %c16_63 = arith.constant 16 : index
    %c0_64 = arith.constant 0 : index
    %116 = vector.load %arg10[%c16_63, %c0_64] : memref<32x384xf32, #tpu.memory_space<vmem>>, vector<1x128xf32>
    tpu.vector_store %arg10[%c16_63, %c0_64], %115 {strides = array<i32>} : memref<32x384xf32, #tpu.memory_space<vmem>>, vector<1x128xf32>,
    %117 = vector.extract_strided_slice %114 {offsets = [0, 0], sizes = [15, 128], strides = [1, 1]} : vector<16x128xf32> to vector<15x128xf32>
    %c17_65 = arith.constant 17 : index
    %c0_66 = arith.constant 0 : index
    %118 = vector.load %arg10[%c17_65, %c0_66] : memref<32x384xf32, #tpu.memory_space<vmem>>, vector<15x128xf32>
    tpu.vector_store %arg10[%c17_65, %c0_66], %117 {strides = array<i32>} : memref<32x384xf32, #tpu.memory_space<vmem>>, vector<15x128xf32>,
    %c16_67 = arith.constant 16 : index
    %c128_68 = arith.constant 128 : index
    %119 = vector.load %arg10[%c16_67, %c128_68] : memref<32x384xf32, #tpu.memory_space<vmem>>, vector<16x128xf32>
    tpu.vector_store %arg10[%c16_67, %c128_68], %114 {strides = array<i32>} : memref<32x384xf32, #tpu.memory_space<vmem>>, vector<16x128xf32>,
    %120 = vector.extract_strided_slice %114 {offsets = [1, 0], sizes = [15, 128], strides = [1, 1]} : vector<16x128xf32> to vector<15x128xf32>
    %c16_69 = arith.constant 16 : index
    %c256_70 = arith.constant 256 : index
    %121 = vector.load %arg10[%c16_69, %c256_70] : memref<32x384xf32, #tpu.memory_space<vmem>>, vector<15x128xf32>
    tpu.vector_store %arg10[%c16_69, %c256_70], %120 {strides = array<i32>} : memref<32x384xf32, #tpu.memory_space<vmem>>, vector<15x128xf32>,
    %cst_71 = arith.constant 0.000000e+00 : f32
    %122 = vector.broadcast %cst_71 : f32 to vector<1x128xf32>
    %c31_72 = arith.constant 31 : index
    %c256_73 = arith.constant 256 : index
    %123 = vector.load %arg10[%c31_72, %c256_73] : memref<32x384xf32, #tpu.memory_space<vmem>>, vector<1x128xf32>
    tpu.vector_store %arg10[%c31_72, %c256_73], %122 {strides = array<i32>} : memref<32x384xf32, #tpu.memory_space<vmem>>, vector<1x128xf32>,
    %c0_74 = arith.constant 0 : index
    %c0_75 = arith.constant 0 : index
    %124 = vector.load %arg10[%c0_74, %c0_75] : memref<32x384xf32, #tpu.memory_space<vmem>>, vector<32x384xf32>
    %125 = arith.truncf %124 : vector<32x384xf32> to vector<32x384xbf16>
    %c0_76 = arith.constant 0 : index
    %c0_77 = arith.constant 0 : index
    %126 = vector.load %arg4[%c0_76, %c0_77] : memref<384x128xbf16, #tpu.memory_space<vmem>>, vector<384x128xbf16>
    %cst_78 = arith.constant dense<0.000000e+00> : vector<32x128xf32>
    %127 = tpu.matmul %125, %126, %cst_78 {dimension_numbers = #tpu.dot_dimension_numbers<[1], [0], [0], [1], [0, 0, 1, 1], [], []>} : vector<32x384xbf16>, vector<384x128xbf16>, vector<32x128xf32> -> vector<32x128xf32>
    %c0_79 = arith.constant 0 : index
    %c0_80 = arith.constant 0 : index
    %128 = vector.load %arg5[%c0_79, %c0_80] : memref<1x128xf32, #tpu.memory_space<vmem>>, vector<1x128xf32>
    %129 = vector.broadcast %128 : vector<1x128xf32> to vector<32x128xf32>
    %130 = arith.addf %127, %129 : vector<32x128xf32>
    %cst_81 = arith.constant 0.000000e+00 : f32
    %131 = vector.broadcast %cst_81 : f32 to vector<32x128xf32>
    %132 = arith.maximumf %130, %131 : vector<32x128xf32>
    %c0_82 = arith.constant 0 : index
    %c0_83 = arith.constant 0 : index
    %133 = vector.load %arg8[%c0_82, %c0_83] : memref<32x128xf32, #tpu.memory_space<vmem>>, vector<32x128xf32>
    tpu.vector_store %arg8[%c0_82, %c0_83], %132 {strides = array<i32>} : memref<32x128xf32, #tpu.memory_space<vmem>>, vector<32x128xf32>,
    return
  }
}

</mosaic_0001>

<bundles_post_ra>
// kernel: up_conv_cat_forward.1
= control target key start
LH: loop header
LB: loop body
LE: loop exit
PB: predicated region body
PF: predicated region fallthrough
CT: control target
= control target key end

     0   :  { %vm46_vm0 = vcmask 516096   ;;  %vm56_vm1 = vcmask 523265   ;;  %v1080_v6 = vmov 0.0   ;;  %vm76_vm2 = vcmask 522240   ;;  %s1081_s20 = smov 64   ;;  %s1083_s14 = smov 80   ;;  %s1395_s0 = inlined_call_operand.vmem [shape: bf16[2,16,64], index: 0, kind: input, shape index: {}]   ;;  %s1396_s2 = inlined_call_operand.vmem [shape: bf16[320,128], index: 2, kind: input, shape index: {}]   ;;  %s1397_s1 = inlined_call_operand.vmem [shape: bf16[32,128], index: 1, kind: input, shape index: {}]   ;;  %s1398_s3 = inlined_call_operand.vmem [shape: f32[32,128], index: 3, kind: input, shape index: {}]   ;;  %s1399_s4 = inlined_call_operand.vmem [shape: bf16[384,128], index: 4, kind: input, shape index: {}]   ;;  %s1400_s6 = inlined_call_operand.vmem [shape: f32[1,128], index: 6, kind: input, shape index: {}]   ;;  %s1401_s7 = inlined_call_operand.vmem [shape: f32[1,128], index: 7, kind: input, shape index: {}]   ;;  %s1402_s5 = inlined_call_operand.vmem [shape: f32[1,128], index: 5, kind: input, shape index: {}]   ;;  %s1403_s8 = inlined_call_operand.vmem [shape: f32[32,128], index: 8, kind: output, shape index: {}]  }
   0x1   :  { %v1040_v0 = vld [vmem:[%s1395_s0] sm:$0xff]   ;;  %v1048_v1 = vld [vmem:[%s1395_s0 + $0x8] sm:$0xff]   ;;  %v994_v2 = vld [vmem:[%s1396_s2 + $0x38] sm:$0xff]  ;;  %47 = vst.msk [vmem:[#allocation2 + $0x8] sm:$0x1] %vm46_vm0, %v1080_v6  ;;  %vm69_vm3 = vcmask 1046528  }
   0x2   :  { %v1142_v3 = vunpack.c.l.bf16 %v1040_v0  ;;  %v1144_v4 = vunpack.c.h.bf16 %v1040_v0  ;;  %v1002_v5 = vld [vmem:[%s1396_s2 + $0x78] sm:$0xff]  ;;  %v1150_v7 = vunpack.c.h.bf16 %v1048_v1  ;;  %298 = vmatpush.bf16.msra.mxu0 %v994_v2  ;;  %v993_v8 = vld [vmem:[%s1396_s2 + $0x30] sm:$0xff]  ;;  %78 = vst.msk [vmem:[#allocation2 + $0x2f] sm:$0x1] %vm46_vm0, %v1080_v6  ;;  %v1163_v13 = vunpack.c.l.bf16 %v1048_v1  ;;  %v992_v20 = vld [vmem:[%s1396_s2 + $0x28] sm:$0xff]  ;;  %s1084_s15 = smov 112  }
   0x3   :  { %v1006_v9 = vld [vmem:[%s1396_s2 + $0x98] sm:$0xff]  ;;  %317 = vmatpush.bf16.msra.mxu1 %v1002_v5  ;;  %v1001_v14 = vld [vmem:[%s1396_s2 + $0x70] sm:$0xff]  ;;  %v1000_v22 = vld [vmem:[%s1396_s2 + $0x68] sm:$0xff]  ;;  %vm58_vm4 = vcmask 523264   ;;  %109 = vst.msk [vmem:[#allocation2 + $0x5f] sm:$0x1] %vm46_vm0, %v1080_v6 }
   0x4   :  { %v71_v10 = vrot.slane %v1144_v4, 1  ;;  %v1065_v11 = vpack.i.bf16 %v1144_v4, %v1142_v3  ;;  %v51_v12 = vrot.slane %v1142_v3, 7  ;;  %v70_v15 = vrot.slane %v1142_v3, 1  ;;  %340 = vmatpush.bf16.msra.mxu2 %v1006_v9  ;;  %v1005_v17 = vld [vmem:[%s1396_s2 + $0x90] sm:$0xff]  ;;  %v1004_v24 = vld [vmem:[%s1396_s2 + $0x88] sm:$0xff]  ;;  %v991_v26 = vld [vmem:[%s1396_s2 + $0x20] sm:$0xff] }
   0x5   :  { %v103_v16 = vrot.slane %v1150_v7, 1  ;;  %v87_v18 = vrot.slane %v1163_v13, 7  ;;  %v102_v19 = vrot.slane %v1163_v13, 1  ;;  %v1070_v25 = vpack.i.bf16 %v1150_v7, %v1163_v13  ;;  %v999_v27 = vld [vmem:[%s1396_s2 + $0x60] sm:$0xff]  ;;  %84 = vst.msk [vmem:[#allocation2 + $0x38] sm:$0x1] %vm46_vm0, %v1080_v6 }
   0x6   :  { %77 = vst.msk [vmem:[#allocation2 + $0x28] sm:$0x7f] %vm76_vm2, %v71_v10  ;;  %1066 = vrot.lane.b32.xlu0 %v1065_v11, %s1081_s20  ;;  %299 = vmatpush.bf16.msra.mxu0 %v993_v8  ;;  %v72_v23 = vsel %vm69_vm3, %v70_v15, %v71_v10  ;;  %v1003_v28 = vld [vmem:[%s1396_s2 + $0x80] sm:$0xff]  ;;  %v990_v29 = vld [vmem:[%s1396_s2 + $0x18] sm:$0xff]  ;;  %v989_v31 = vld [vmem:[%s1396_s2 + $0x10] sm:$0xff]  ;;  %v52_v34 = vrot.slane %v1144_v4, 7 }
   0x7   :  { %57 = vst.msk [vmem:[#allocation2 + $0x8] sm:$0xfe] %vm56_vm1, %v51_v12  ;;  %v104_v21 = vsel %vm69_vm3, %v102_v19, %v103_v16  ;;  %318 = vmatpush.bf16.msra.mxu1 %v1001_v14  ;;  %v998_v30 = vld [vmem:[%s1396_s2 + $0x58] sm:$0xff]  ;;  %v988_v32 = vld [vmem:[%s1396_s2 + $0x8] sm:$0xff]  ;;  %v987_v33 = vld [vmem:[%s1396_s2] sm:$0xff]  ;;  %vm50_vm5 = vcmask 1040384  }
   0x8   :  { %108 = vst.msk [vmem:[#allocation2 + $0x58] sm:$0x7f] %vm76_vm2, %v103_v16  ;;  %341 = vmatpush.bf16.msra.mxu2 %v1005_v17  ;;  %v53_v38 = vsel %vm50_vm5, %v51_v12, %v52_v34  ;;  %v997_v39 = vld [vmem:[%s1396_s2 + $0x50] sm:$0xff]  ;;  %v1075_v40 = vld [vmem:[%s1397_s1] sm:$0xff]  ;;  %v996_v41 = vld [vmem:[%s1396_s2 + $0x48] sm:$0xff]  ;;  %v88_v43 = vrot.slane %v1150_v7, 7 }
   0x9   :  { %92 = vst.msk [vmem:[#allocation2 + $0x38] sm:$0xfe] %vm56_vm1, %v87_v18  ;;  %v995_v42 = vld [vmem:[%s1396_s2 + $0x40] sm:$0xff]  ;;  %v1076_v48 = vld [vmem:[%s1397_s1 + $0x8] sm:$0xff]  ;;  %vm66_vm6 = vcmask 1048064   ;;  %v170_v5 = vld [vmem:[%s1398_s3 + $0x10] sm:$0xff] }
   0xa   :  { %107 = vst.msk [vmem:[#allocation2 + $0x40] sm:$0xff] %vm58_vm4, %v104_v21  ;;  %300 = vmatpush.bf16.msra.mxu0 %v992_v20  ;;  %v89_v44 = vsel %vm50_vm5, %v87_v18, %v88_v43  ;;  %v168_v3 = vld [vmem:[%s1398_s3] sm:$0xff]  ;;  %v169_v4 = vld [vmem:[%s1398_s3 + $0x8] sm:$0xff]  ;;  %v171_v16 = vld [vmem:[%s1398_s3 + $0x18] sm:$0xff]  ;;  %s1082_s3 = smov 48   ;;  %s1085_s16 = smov 96  }
   0xb   :  { %319 = vmatpush.bf16.msra.mxu1 %v1000_v22  ;;  %75 = vst.msk [vmem:[#allocation2 + $0x10] sm:$0xff] %vm58_vm4, %v72_v23  ;;  %s1086_s17 = smov 16   ;;  %s1087_s18 = smov 32   ;;  %vm378_vm7 = vcmask 123904   ;;  %vm425_vm8 = vcmask 130048   ;;  %vm427_vm9 = vcmask 261120  }
   0xc   :  { %342 = vmatpush.bf16.msra.mxu2 %v1004_v24  ;;  %484 = vst [vmem:[#allocation3] sm:$0x1] %v1080_v6  ;;  %vm429_vm10 = vcmask 392192   ;;  %vm432_vm11 = vcmask 654336   ;;  %vm434_vm12 = vcmask 785408   ;;  %vm436_vm13 = vcmask 916480  }
   0xd   :  { %503 = vst [vmem:[#allocation3 + $0x2f] sm:$0x1] %v1080_v6  ;;  %v115_v36 = vld [vmem:[#allocation2 + $0x28] sm:$0xff] }
   0xe   :  { %1071 = vrot.lane.b32.xlu0 %v1070_v25, %s1081_s20  ;;  %301 = vmatpush.bf16.msra.mxu0 %v991_v26  ;;  %504 = vst [vmem:[#allocation3 + $0x30] sm:$0x1] %v1080_v6 }
   0xf   :  { %320 = vmatpush.bf16.msra.mxu1 %v999_v27  ;;  %523 = vst [vmem:[#allocation3 + $0x5f] sm:$0x1] %v1080_v6  ;;  %v121_v46 = vld [vmem:[#allocation2 + $0x58] sm:$0xff] }
  0x10   :  { %343 = vmatpush.bf16.msra.mxu2 %v1003_v28  ;;  %59 = vst.msk [vmem:[#allocation2 + $0x20] sm:$0xff] %vm58_vm4, %v53_v38 }
  0x11   :  { %v118_v45 = vld [vmem:[#allocation2 + $0x40] sm:$0xff]  ;;  %93 = vst.msk [vmem:[#allocation2 + $0x50] sm:$0xff] %vm58_vm4, %v89_v44 }
  0x12   :  { %302 = vmatpush.bf16.msra.mxu0 %v990_v29  ;;  %v112_v35 = vld [vmem:[#allocation2 + $0x10] sm:$0xff]  ;;  %v127_v47 = vpack.c.bf16 %v121_v46, %v118_v45 }
  0x13   :  { %321 = vmatpush.bf16.msra.mxu1 %v998_v30  ;;  %v124_v37 = vpack.c.bf16 %v115_v36, %v112_v35 }
  0x15   :  { %889 = vmatmul.msk.bf16.vlgmr.msra.gmra.mxu2 %vm58_vm4, %v124_v37 }
  0x16   :  { %303 = vmatpush.bf16.msra.mxu0 %v989_v31 }
  0x17   :  { %322 = vmatpush.bf16.msra.mxu1 %v997_v39 }
  0x1a   :  { %304 = vmatpush.bf16.msra.mxu0 %v988_v32 }
  0x1b   :  { %323 = vmatpush.bf16.msra.mxu1 %v996_v41 }
  0x1e   :  { %305 = vmatpush.bf16.msra.mxu0 %v987_v33 }
  0x1f   :  { %324 = vmatpush.bf16.msra.mxu1 %v995_v42 }
  0x21   :  { %306 = vmatmul.bf16.vlgmr.msra.gmra.mxu0 %v1075_v40 }
  0x25   :  { %890 = vmatmul.msk.bf16.gmra.mxu2 %vm58_vm4, %v127_v47 }
  0x31   :  { %311 = vmatmul.bf16.gmra.mxu0 %v1076_v48 }
  0x78   :  { %v1067_v49 = vpop.permute.xlu0 %1066 }
  0x79   :  { %v1069_v50 = vunpack.i.h.bf16 %v1067_v49  ;;  %v1068_v51 = vunpack.i.l.bf16 %v1067_v49 }
  0x7b   :  { %67 = vst.msk [vmem:[#allocation2 + $0x8] sm:$0xff] %vm66_vm6, %v1068_v51 }
  0x7c   :  { %68 = vst.msk [vmem:[#allocation2 + $0x20] sm:$0xff] %vm66_vm6, %v1069_v50 }
  0x80   :  { %v1072_v52 = vpop.permute.xlu0 %1071 }
  0x81   :  { %v1074_v53 = vunpack.i.h.bf16 %v1072_v52  ;;  %v1073_v54 = vunpack.i.l.bf16 %v1072_v52 }
  0x82   :  { %v111_v55 = vld [vmem:[#allocation2 + $0x8] sm:$0xff] }
  0x83   :  { %v114_v56 = vld [vmem:[#allocation2 + $0x20] sm:$0xff]  ;;  %101 = vst.msk [vmem:[#allocation2 + $0x50] sm:$0xff] %vm66_vm6, %v1074_v53 }
  0x84   :  { %v123_v57 = vpack.c.bf16 %v114_v56, %v111_v55  ;;  %100 = vst.msk [vmem:[#allocation2 + $0x38] sm:$0xff] %vm66_vm6, %v1073_v54 }
  0x86   :  { %325 = vmatmul.bf16.vlgmr.msra.gmra.mxu1 %v123_v57 }
  0x8a   :  { %v120_v59 = vld [vmem:[#allocation2 + $0x50] sm:$0xff] }
  0x8b   :  { %v117_v58 = vld [vmem:[#allocation2 + $0x38] sm:$0xff] }
  0x8c   :  { %v126_v60 = vpack.c.bf16 %v120_v59, %v117_v58 }
  0x96   :  { %330 = vmatmul.bf16.gmra.mxu1 %v126_v60 }
  0x98   :  { %v345_v62 = vpop.f32.mrf.mxu2 }
  0x9e   :  { %v307_v61 = vpop.f32.mrf.mxu0 }
  0x9f   :  { %v308_v7 = vadd.f32 %v307_v61, %v168_v3 }
  0xa0   :  { %v347_v1 = vpop.f32.mrf.mxu2 }
  0xa6   :  { %v309_v63 = vpop.f32.mrf.mxu0 }
  0xa7   :  { %v310_v8 = vadd.f32 %v309_v63, %v169_v4 }
  0xa8   :  { %v350_v11 = vpop.f32.mrf.mxu2 }
  0xae   :  { %v312_v6 = vpop.f32.mrf.mxu0 }
  0xaf   :  { %v313_v9 = vadd.f32 %v312_v6, %v170_v5 }
  0xb0   :  { %v352_v27 = vpop.f32.mrf.mxu2 }
  0xb6   :  { %v314_v17 = vpop.f32.mrf.mxu0 }
  0xb7   :  { %v315_v21 = vadd.f32 %v314_v17, %v171_v16  ;;  %v1021_v17 = vld [vmem:[%s1399_s4 + $0x70] sm:$0xff] }
 0x103   :  { %v326_v0 = vpop.f32.mrf.mxu1 }
 0x104   :  { %v327_v13 = vadd.f32 %v326_v0, %v308_v7 }
 0x106   :  { %v1259_v18 = vadd.f32 %v345_v62, %v327_v13 }
 0x108   :  { %v364_v23 = vmul.f32 %v1259_v18, %v1259_v18 }
 0x10b   :  { %v328_v2 = vpop.f32.mrf.mxu1 }
 0x10c   :  { %v329_v10 = vadd.f32 %v328_v2, %v310_v8 }
 0x10e   :  { %v1254_v15 = vadd.f32 %v347_v1, %v329_v10 }
 0x110   :  { %v365_v20 = vmul.f32 %v1254_v15, %v1254_v15  ;;  %v355_v24 = vadd.f32 %v1254_v15, %v1259_v18 }
 0x112   :  { %v368_v28 = vadd.f32 %v365_v20, %v364_v23 }
 0x113   :  { %v331_v12 = vpop.f32.mrf.mxu1 }
 0x114   :  { %v332_v14 = vadd.f32 %v331_v12, %v313_v9  ;;  %v1022_v9 = vld [vmem:[%s1399_s4 + $0x78] sm:$0xff] }
 0x115   :  { %757 = vmatpush.bf16.msrb.mxu2 %v1022_v9 }
 0x116   :  { %v1261_v19 = vadd.f32 %v350_v11, %v332_v14 }
 0x118   :  { %v366_v25 = vmul.f32 %v1261_v19, %v1261_v19  ;;  %v356_v29 = vadd.f32 %v355_v24, %v1261_v19  ;;  %v1014_v24 = vld [vmem:[%s1399_s4 + $0x38] sm:$0xff] }
 0x119   :  { %758 = vmatpush.bf16.msrb.mxu2 %v1021_v17  ;;  %738 = vmatpush.bf16.msra.mxu3 %v1014_v24 }
 0x11a   :  { %v369_v31 = vadd.f32 %v368_v28, %v366_v25  ;;  %v1030_v25 = vld [vmem:[%s1399_s4 + $0xb8] sm:$0xff] }
 0x11b   :  { %v333_v22 = vpop.f32.mrf.mxu1  ;;  %776 = vmatpush.bf16.msrb.mxu0 %v1030_v25  ;;  %1049 = vmatpush.bf16.msrb.mxu1 %v1030_v25 }
 0x11c   :  { %v334_v26 = vadd.f32 %v333_v22, %v315_v21  ;;  %v1020_v22 = vld [vmem:[%s1399_s4 + $0x68] sm:$0xff] }
 0x11d   :  { %759 = vmatpush.bf16.msrb.mxu2 %v1020_v22 }
 0x11e   :  { %v1272_v30 = vadd.f32 %v352_v27, %v334_v26  ;;  %v1019_v27 = vld [vmem:[%s1399_s4 + $0x60] sm:$0xff] }
 0x120   :  { %v357_v32 = vadd.f32 %v356_v29, %v1272_v30  ;;  %v367_v33 = vmul.f32 %v1272_v30, %v1272_v30  ;;  %v1013_v29 = vld [vmem:[%s1399_s4 + $0x30] sm:$0xff] }
 0x121   :  { %760 = vmatpush.bf16.msrb.mxu2 %v1019_v27  ;;  %739 = vmatpush.bf16.msra.mxu3 %v1013_v29 }
 0x122   :  { %v358_v34 = vrot.slane %v357_v32, 4  ;;  %v370_v35 = vadd.f32 %v369_v31, %v367_v33  ;;  %v1029_v31 = vld [vmem:[%s1399_s4 + $0xb0] sm:$0xff]  ;;  %v1012_v33 = vld [vmem:[%s1399_s4 + $0x28] sm:$0xff] }
 0x123   :  { %777 = vmatpush.bf16.msrb.mxu0 %v1029_v31  ;;  %1050 = vmatpush.bf16.msrb.mxu1 %v1029_v31 }
 0x124   :  { %v359_v36 = vadd.f32 %v358_v34, %v357_v32  ;;  %v371_v37 = vrot.slane %v370_v35, 4  ;;  %v1018_v32 = vld [vmem:[%s1399_s4 + $0x58] sm:$0xff]  ;;  %v1028_v34 = vld [vmem:[%s1399_s4 + $0xa8] sm:$0xff] }
 0x125   :  { %761 = vmatpush.bf16.msrb.mxu2 %v1018_v32  ;;  %740 = vmatpush.bf16.msra.mxu3 %v1012_v33 }
 0x126   :  { %v360_v38 = vrot.slane %v359_v36, 2  ;;  %v372_v39 = vadd.f32 %v371_v37, %v370_v35  ;;  %v1017_v35 = vld [vmem:[%s1399_s4 + $0x50] sm:$0xff]  ;;  %v1011_v37 = vld [vmem:[%s1399_s4 + $0x20] sm:$0xff] }
 0x127   :  { %778 = vmatpush.bf16.msrb.mxu0 %v1028_v34  ;;  %1051 = vmatpush.bf16.msrb.mxu1 %v1028_v34  ;;  %v1077_v34 = vld [vmem:[%s1402_s5] ss:$0 sm:$0xff] }
 0x128   :  { %v361_v40 = vadd.f32 %v360_v38, %v359_v36  ;;  %v373_v41 = vrot.slane %v372_v39, 2  ;;  %v1027_v38 = vld [vmem:[%s1399_s4 + $0xa0] sm:$0xff] }
 0x129   :  { %762 = vmatpush.bf16.msrb.mxu2 %v1017_v35  ;;  %741 = vmatpush.bf16.msra.mxu3 %v1011_v37 }
 0x12a   :  { %v362_v42 = vrot.slane %v361_v40, 1  ;;  %v374_v43 = vadd.f32 %v373_v41, %v372_v39 }
 0x12b   :  { %779 = vmatpush.bf16.msrb.mxu0 %v1027_v38  ;;  %1052 = vmatpush.bf16.msrb.mxu1 %v1027_v38 }
 0x12c   :  { %v375_v44 = vrot.slane %v374_v43, 1  ;;  %v363_v45 = vadd.f32 %v362_v42, %v361_v40  ;;  %v1016_v40 = vld [vmem:[%s1399_s4 + $0x48] sm:$0xff]  ;;  %v1010_v42 = vld [vmem:[%s1399_s4 + $0x18] sm:$0xff] }
 0x12d   :  { %763 = vmatpush.bf16.msrb.mxu2 %v1016_v40  ;;  %742 = vmatpush.bf16.msra.mxu3 %v1010_v42 }
 0x12e   :  { %v376_v46 = vadd.f32 %v375_v44, %v374_v43  ;;  %v1026_v43 = vld [vmem:[%s1399_s4 + $0x98] sm:$0xff] }
 0x12f   :  { %780 = vmatpush.bf16.msrb.mxu0 %v1026_v43  ;;  %1053 = vmatpush.bf16.msrb.mxu1 %v1026_v43 }
 0x130   :  { %v377_v47 = vsel %vm50_vm5, %v363_v45, %v376_v46  ;;  %v1015_v45 = vld [vmem:[%s1399_s4 + $0x40] sm:$0xff] }
 0x131   :  { %407 = vrot.lane.b32.xlu0 %v377_v47, %s1082_s3  ;;  %395 = vrot.lane.b32.xlu2 %v377_v47, %s1083_s14  ;;  %v379_v48 = vsel %vm378_vm7, %v377_v47, 0.0 }
 0x132   :  { %383 = vrot.lane.b32.xlu1 %v377_v47, %s1084_s15  ;;  %764 = vmatpush.bf16.msrb.mxu2 %v1015_v45 }
 0x139   :  { %401 = vrot.lane.b32.xlu2 %v377_v47, %s1081_s20 }
 0x13a   :  { %389 = vrot.lane.b32.xlu1 %v377_v47, %s1085_s16 }
 0x141   :  { %419 = vrot.lane.b32.xlu2 %v377_v47, %s1086_s17 }
 0x142   :  { %413 = vrot.lane.b32.xlu1 %v377_v47, %s1087_s18  ;;  %v1009_v47 = vld [vmem:[%s1399_s4 + $0x10] sm:$0xff] }
 0x143   :  { %743 = vmatpush.bf16.msra.mxu3 %v1009_v47 }
 0x15b   :  { %380 = vadd.xlane.f32.xlu0 %v379_v48  ;;  %v1025_v48 = vld [vmem:[%s1399_s4 + $0x90] sm:$0xff] }
 0x15c   :  { %781 = vmatpush.bf16.msrb.mxu0 %v1025_v48  ;;  %1054 = vmatpush.bf16.msrb.mxu1 %v1025_v48 }
 0x18b   :  { %v396_v49 = vpop.permute.xlu2 %395 }
 0x18c   :  { %v398_v60 = vsel %vm378_vm7, %v396_v49, 0.0 }
 0x193   :  { %v402_v50 = vpop.permute.xlu2 %401 }
 0x194   :  { %v404_v51 = vsel %vm378_vm7, %v402_v50, 0.0 }
 0x195   :  { %405 = vadd.xlane.f32.xlu0 %v404_v51  ;;  %v1008_v51 = vld [vmem:[%s1399_s4 + $0x8] sm:$0xff] }
 0x196   :  { %744 = vmatpush.bf16.msra.mxu3 %v1008_v51 }
 0x19b   :  { %v420_v52 = vpop.permute.xlu2 %419 }
 0x19c   :  { %v422_v53 = vsel %vm378_vm7, %v420_v52, 0.0  ;;  %v1024_v52 = vld [vmem:[%s1399_s4 + $0x88] sm:$0xff] }
 0x19d   :  { %423 = vadd.xlane.f32.xlu0 %v422_v53  ;;  %782 = vmatpush.bf16.msrb.mxu0 %v1024_v52  ;;  %v1007_v53 = vld [vmem:[%s1399_s4] sm:$0xff] }
 0x19e   :  { %1055 = vmatpush.bf16.msrb.mxu1 %v1024_v52  ;;  %745 = vmatpush.bf16.msra.mxu3 %v1007_v53 }
 0x1a3   :  { %v408_v56 = vpop.permute.xlu0 %407 }
 0x1a4   :  { %v384_v54 = vpop.permute.xlu1 %383  ;;  %v410_v58 = vsel %vm378_vm7, %v408_v56, 0.0 }
 0x1a5   :  { %v386_v55 = vsel %vm378_vm7, %v384_v54, 0.0  ;;  %v1023_v54 = vld [vmem:[%s1399_s4 + $0x80] sm:$0xff] }
 0x1a6   :  { %387 = vadd.xlane.f32.xlu1 %v386_v55  ;;  %v445_v55 = vld [vmem:[%s1400_s6] sm:$0x1]  ;;  %783 = vmatpush.bf16.msrb.mxu0 %v1023_v54 }
 0x1a7   :  { %1056 = vmatpush.bf16.msrb.mxu1 %v1023_v54 }
 0x1ac   :  { %v390_v57 = vpop.permute.xlu1 %389 }
 0x1ad   :  { %v392_v59 = vsel %vm378_vm7, %v390_v57, 0.0 }
 0x1ae   :  { %411 = vadd.xlane.f32.xlu1 %v410_v58  ;;  %393 = vadd.xlane.f32.xlu2 %v392_v59  ;;  %v463_v58 = vld [vmem:[%s1401_s7] sm:$0x1] }
 0x1b4   :  { %v414_v61 = vpop.permute.xlu1 %413 }
 0x1b5   :  { %v416_v62 = vsel %vm378_vm7, %v414_v61, 0.0 }
 0x1b6   :  { %399 = vadd.xlane.f32.xlu2 %v398_v60 }
 0x1be   :  { %417 = vadd.xlane.f32.xlu2 %v416_v62 }
 0x1ce   :  { %v381_v63 = vpop.xlane.xlu0 %380 }
 0x208   :  { %v406_v2 = vpop.xlane.xlu0 %405 }
 0x210   :  { %v424_v12 = vpop.xlane.xlu0 %423 }
 0x219   :  { %v388_v1 = vpop.xlane.xlu1 %387 }
 0x21a   :  { %v426_v3 = vsel %vm425_vm8, %v381_v63, %v388_v1 }
 0x221   :  { %v394_v0 = vpop.xlane.xlu2 %393  ;;  %v412_v8 = vpop.xlane.xlu1 %411 }
 0x222   :  { %v428_v5 = vsel %vm427_vm9, %v426_v3, %v394_v0 }
 0x229   :  { %v400_v4 = vpop.xlane.xlu2 %399 }
 0x22a   :  { %v430_v6 = vsel %vm429_vm10, %v428_v5, %v400_v4 }
 0x22b   :  { %v431_v7 = vsel %vm58_vm4, %v430_v6, %v406_v2 }
 0x22c   :  { %v433_v11 = vsel %vm432_vm11, %v431_v7, %v412_v8 }
 0x231   :  { %v418_v10 = vpop.xlane.xlu2 %417 }
 0x232   :  { %v435_v13 = vsel %vm434_vm12, %v433_v11, %v418_v10 }
 0x233   :  { %v437_v14 = vsel %vm436_vm13, %v435_v13, %v424_v12 }
 0x234   :  { %v1291_v16 = vmul.f32 0.001953125, %v437_v14 }
 0x236   :  { %v439_v20 = vmul.f32 %v1291_v16, %v1291_v16 }
 0x238   :  { %v441_v21 = vrot.slane %v439_v20, 7 }
 0x23a   :  { %v443_v23 = vsub.f32 %v1291_v16, %v441_v21 }
 0x23c   :  { %v444_v26 = vmax.f32 %v443_v23, 0.0 }
 0x23e   :  { %v446_v28 = vadd.f32 1e-05, %v444_v26 }
 0x240   :  { %1078 = vrsqrt.f32 %v446_v28  ;;  %vm453_vm15 = vweird.f32 %v446_v28 }
 0x246   :  { %v1079_v36 = vpop.eup %1078 }
 0x247   :  { %v448_v39 = vmul.f32 %v1079_v36, %v446_v28  ;;  %vm454_vm14 = vweird.f32 %v1079_v36 }
 0x248   :  { %vm455_vm0 = vmor %vm453_vm15, %vm454_vm14 }
 0x249   :  { %v449_v41 = vmul.f32 %v1079_v36, %v448_v39 }
 0x24b   :  { %v450_v44 = vmul.f32 0.5, %v449_v41 }
 0x24d   :  { %v451_v46 = vsub.f32 1.5, %v450_v44 }
 0x24f   :  { %v452_v49 = vmul.f32 %v1079_v36, %v451_v46 }
 0x251   :  { %v456_v50 = vsel %vm455_vm0, %v1079_v36, %v452_v49 }
 0x252   :  { %458 = vst [vmem:[#allocation1] sm:$0xff] %v456_v50 }
 0x259   :  { %v460_v56 = vld [vmem:[#allocation1 + $0x1] ss:$9 sm:$0xff] }
 0x25a   :  { %v462_v57 = vmul.f32 %v460_v56, %v445_v55 }
 0x25c   :  { %v464_v59 = vmul.f32 %v462_v57, %v1291_v16  ;;  %v467_v60 = vperm.slane %v462_v57, 0 }
 0x25e   :  { %v465_v61 = vsub.f32 %v463_v58, %v464_v59  ;;  %v469_v62 = vmul.f32 %v467_v60, %v1259_v18  ;;  %v470_v63 = vmul.f32 %v467_v60, %v1254_v15  ;;  %v471_v0 = vmul.f32 %v467_v60, %v1261_v19 }
 0x25f   :  { %v472_v1 = vmul.f32 %v467_v60, %v1272_v30 }
 0x260   :  { %v474_v2 = vperm.slane %v465_v61, 0 }
 0x262   :  { %v476_v3 = vadd.f32 %v474_v2, %v469_v62  ;;  %v477_v4 = vadd.f32 %v474_v2, %v470_v63  ;;  %v478_v5 = vadd.f32 %v474_v2, %v471_v0  ;;  %v479_v6 = vadd.f32 %v474_v2, %v472_v1 }
 0x264   :  { %v480_v7 = vmax.f32 %v476_v3, 0.0  ;;  %v481_v8 = vmax.f32 %v477_v4, 0.0  ;;  %v482_v9 = vmax.f32 %v478_v5, 0.0  ;;  %v483_v10 = vmax.f32 %v479_v6, 0.0 }
 0x266   :  { %v487_v11 = vrot.slane %v480_v7, 7  ;;  %v488_v12 = vrot.slane %v481_v8, 7  ;;  %v496_v13 = vrot.slane %v480_v7, 1  ;;  %v497_v14 = vrot.slane %v481_v8, 1 }
 0x267   :  { %v507_v18 = vrot.slane %v482_v9, 7  ;;  %v508_v16 = vrot.slane %v483_v10, 7  ;;  %v537_v30 = vpack.c.bf16 %v481_v8, %v480_v7  ;;  %v516_v17 = vrot.slane %v482_v9, 1 }
 0x268   :  { %v489_v15 = vsel %vm50_vm5, %v487_v11, %v488_v12  ;;  %492 = vst [vmem:[#allocation3] sm:$0xfe] %v487_v11  ;;  %v498_v19 = vsel %vm69_vm3, %v496_v13, %v497_v14  ;;  %v517_v20 = vrot.slane %v483_v10, 1  ;;  %v540_v28 = vpack.c.bf16 %v483_v10, %v482_v9 }
 0x269   :  { %v509_v21 = vsel %vm50_vm5, %v507_v18, %v508_v16  ;;  %765 = vmatmul.bf16.vlgmr.msrb.gmra.mxu2 %v537_v30  ;;  %502 = vst [vmem:[#allocation3 + $0x28] sm:$0x7f] %v497_v14 }
 0x26a   :  { %512 = vst [vmem:[#allocation3 + $0x30] sm:$0xfe] %v507_v18  ;;  %v518_v22 = vsel %vm69_vm3, %v516_v17, %v517_v20 }
 0x26b   :  { %522 = vst [vmem:[#allocation3 + $0x58] sm:$0x7f] %v517_v20 }
 0x26f   :  { %v524_v23 = vld [vmem:[#allocation3] sm:$0xff] }
 0x270   :  { %v536_v24 = vpack.c.bf16 %v489_v15, %v524_v23  ;;  %v529_v25 = vld [vmem:[#allocation3 + $0x28] sm:$0xff] }
 0x271   :  { %v538_v26 = vpack.c.bf16 %v529_v25, %v498_v19  ;;  %v530_v31 = vld [vmem:[#allocation3 + $0x30] sm:$0xff] }
 0x272   :  { %746 = vmatmul.bf16.vlgmr.msra.gmra.mxu3 %v536_v24  ;;  %v535_v27 = vld [vmem:[#allocation3 + $0x58] sm:$0xff]  ;;  %v539_v32 = vpack.c.bf16 %v509_v21, %v530_v31 }
 0x273   :  { %784 = vmatmul.bf16.vlgmr.msrb.gmra.mxu0 %v538_v26  ;;  %v541_v29 = vpack.c.bf16 %v535_v27, %v518_v22 }
 0x275   :  { %789 = vmatmul.bf16.vlgmr.msrb.gmra.mxu1 %v541_v29 }
 0x279   :  { %770 = vmatmul.bf16.gmra.mxu2 %v540_v28 }
 0x282   :  { %751 = vmatmul.bf16.gmra.mxu3 %v539_v32 }
 0x2ec   :  { %v766_v33 = vpop.f32.mrf.mxu2 }
 0x2f0   :  { %v785_v37 = vpop.f32.mrf.mxu0 }
 0x2f2   :  { %v790_v51 = vpop.f32.mrf.mxu1 }
 0x2f4   :  { %v768_v40 = vpop.f32.mrf.mxu2 }
 0x2f5   :  { %v747_v35 = vpop.f32.mrf.mxu3 }
 0x2f6   :  { %v748_v36 = vadd.f32 %v1077_v34, %v747_v35 }
 0x2f8   :  { %v767_v38 = vadd.f32 %v766_v33, %v748_v36  ;;  %v787_v45 = vpop.f32.mrf.mxu0 }
 0x2fa   :  { %v786_v39 = vadd.f32 %v785_v37, %v767_v38  ;;  %v792_v59 = vpop.f32.mrf.mxu1 }
 0x2fc   :  { %v795_v41 = vmax.f32 %v786_v39, 0.0  ;;  %v771_v48 = vpop.f32.mrf.mxu2 }
 0x2fd   :  { %v749_v42 = vpop.f32.mrf.mxu3 }
 0x2fe   :  { %799 = vst [vmem:[%s1403_s8] sm:$0xff] %v795_v41  ;;  %v750_v43 = vadd.f32 %v1077_v34, %v749_v42 }
 0x300   :  { %v769_v44 = vadd.f32 %v768_v40, %v750_v43 }
 0x302   :  { %v788_v46 = vadd.f32 %v787_v45, %v769_v44 }
 0x304   :  { %v796_v47 = vmax.f32 %v788_v46, 0.0  ;;  %v773_v57 = vpop.f32.mrf.mxu2 }
 0x305   :  { %v752_v49 = vpop.f32.mrf.mxu3 }
 0x306   :  { %800 = vst [vmem:[%s1403_s8 + $0x8] sm:$0xff] %v796_v47  ;;  %v753_v50 = vadd.f32 %v1077_v34, %v752_v49 }
 0x308   :  { %v772_v52 = vadd.f32 %v771_v48, %v753_v50 }
 0x30a   :  { %v791_v53 = vadd.f32 %v790_v51, %v772_v52 }
 0x30c   :  { %v797_v54 = vmax.f32 %v791_v53, 0.0 }
 0x30d   :  { %v754_v55 = vpop.f32.mrf.mxu3 }
 0x30e   :  { %801 = vst [vmem:[%s1403_s8 + $0x10] sm:$0xff] %v797_v54  ;;  %v755_v56 = vadd.f32 %v1077_v34, %v754_v55 }
 0x310   :  { %v774_v58 = vadd.f32 %v773_v57, %v755_v56 }
 0x312   :  { %v793_v60 = vadd.f32 %v792_v59, %v774_v58 }
 0x314   :  { %v798_v61 = vmax.f32 %v793_v60, 0.0 }
 0x316   :  { %802 = vst [vmem:[%s1403_s8 + $0x18] sm:$0xff] %v798_v61 }

</bundles_post_ra>
